<compile_context>
chip_gen: v7x
topology: tpu7x:2x2x1
jax: 0.10.0
libtpu: 0.0.40
codegen_flags: <defaults>
</compile_context>

<pallas_src>
import functools

import jax
import jax.numpy as jnp
from jax.experimental import pallas as pl
from jax.experimental.pallas import tpu as pltpu

_LANE = 128           # TPU lane width (last vreg dim)
_SUBLANE_BF16 = 16    # bf16 sublane packing (rows per vreg)


def _round_up(x, m):
    return ((x + m - 1) // m) * m


def _cdiv(a, b):
    return -(-a // b)


# -----------------------------------------------------------------------------
# Kernel: one batch tile of  Linear+ReLU -> Linear+ReLU -> fused dueling head
# -----------------------------------------------------------------------------
def dueling_q_kernel(x_ref, w1_ref, b1_ref, w2_ref, b2_ref, wq_ref, bq_ref, q_ref):
    x = x_ref[...]                                                       # (TB, in_dim) bf16
    h1 = jnp.dot(x, w1_ref[...], preferred_element_type=jnp.float32) + b1_ref[...]
    h1 = jnp.maximum(h1, 0.0).astype(jnp.bfloat16)                       # (TB, h1)
    h2 = jnp.dot(h1, w2_ref[...], preferred_element_type=jnp.float32) + b2_ref[...]
    h2 = jnp.maximum(h2, 0.0).astype(jnp.bfloat16)                       # (TB, h2)
    q_ref[...] = (jnp.dot(h2, wq_ref[...], preferred_element_type=jnp.float32)
                  + bq_ref[...])                                         # (TB, A_pad) f32


# -----------------------------------------------------------------------------
# One-time parameter preparation (NOT per forward call)
# -----------------------------------------------------------------------------
def prepare_params(params, n_actions):
    """Fold dueling heads into one Linear, cast weights to bf16, and pad the
    head to a lane-dense 128-wide output.  Call once at param load/update.

    q = v + a - mean(a) = feats @ (wv + wa - mean_k(wa)) + (bv + ba - mean(ba))
    (exact algebra; bf16 cast of the folded head weight changes centering only
    at the rounding level — keep wq in f32 if bit-exact centering is required).
    """
    w1, b1, w2, b2, wv, bv, wa, ba = params
    wq = wv + wa - jnp.mean(wa, axis=1, keepdims=True)                   # (h2, A) f32
    bq = bv + ba - jnp.mean(ba, axis=1, keepdims=True)                   # (1, A) f32
    a_pad = _round_up(max(n_actions, _LANE), _LANE)
    wq = jnp.pad(wq, ((0, 0), (0, a_pad - n_actions)))
    bq = jnp.pad(bq, ((0, 0), (0, a_pad - n_actions)))
    return (w1.astype(jnp.bfloat16), b1,
            w2.astype(jnp.bfloat16), b2,
            wq.astype(jnp.bfloat16), bq)


# -----------------------------------------------------------------------------
# Forward wrapper
# -----------------------------------------------------------------------------
def _choose_batch_tile(B, block_b):
    """Batch tile: multiple of 16 (bf16 sublane packing).  Small batches use a
    single tile (avoid duplicating the ~650 KB weight DMA across TCs); large
    batches get >=2 tiles so ("parallel",) engages both v7x TensorCores."""
    b16 = _round_up(B, _SUBLANE_BF16)
    if b16 <= block_b and B < 1024:
        return b16
    n_tiles = max(2, _cdiv(b16, block_b))
    return min(block_b, _round_up(_cdiv(B, n_tiles), _SUBLANE_BF16))


def _resident_spec(shape):
    """Constant-index weight/bias blocks: single-buffer them (the default
    double-buffer would allocate a second, never-filled VMEM copy)."""
    idx = lambda i: (0, 0)
    buffered = getattr(pl, "Buffered", None)
    if buffered is not None:
        try:
            return pl.BlockSpec(shape, idx, pipeline_mode=buffered(1))
        except TypeError:   # older jax without pipeline_mode kwarg
            pass
    return pl.BlockSpec(shape, idx)


@functools.partial(jax.jit, static_argnames=("n_actions", "block_b"))
def dueling_q_forward(x, prepared, *, n_actions, block_b=1024):
    """x: (B, C, H, W) -> (B, n_actions) float32.  `prepared` from prepare_params."""
    w1b, b1, w2b, b2, wqb, bq = prepared
    B = x.shape[0]
    in_dim, h1 = w1b.shape
    h2 = w2b.shape[1]
    a_pad = wqb.shape[1]

    x2 = x.astype(jnp.float32).reshape(B, -1).astype(jnp.bfloat16)       # (B, in_dim)

    tb = _choose_batch_tile(B, block_b)
    b_pad = _round_up(B, tb)
    if b_pad != B:
        x2 = jnp.pad(x2, ((0, b_pad - B), (0, 0)))
    grid = (b_pad // tb,)

    grid_spec = pltpu.PrefetchScalarGridSpec(
        num_scalar_prefetch=0,
        grid=grid,
        in_specs=[
            pl.BlockSpec((tb, in_dim), lambda i: (i, 0)),   # x tile (double-buffered)
            _resident_spec((in_dim, h1)),                   # w1 (resident)
            _resident_spec((1, h1)),                        # b1
            _resident_spec((h1, h2)),                       # w2
            _resident_spec((1, h2)),                        # b2
            _resident_spec((h2, a_pad)),                    # fused head weight
            _resident_spec((1, a_pad)),                     # fused head bias
        ],
        out_specs=pl.BlockSpec((tb, a_pad), lambda i: (i, 0)),
    )

    flops = 2 * b_pad * (in_dim * h1 + h1 * h2 + h2 * a_pad)
    bytes_accessed = int(
        x2.size * 2 + w1b.size * 2 + w2b.size * 2 + wqb.size * 2
        + b1.size * 4 + b2.size * 4 + bq.size * 4 + b_pad * a_pad * 4)

    q = pl.pallas_call(
        dueling_q_kernel,
        out_shape=jax.ShapeDtypeStruct((b_pad, a_pad), jnp.float32),
        grid_spec=grid_spec,
        compiler_params=pltpu.CompilerParams(
            dimension_semantics=("parallel",),   # batch tiles -> both TCs on v7x
        ),
        cost_estimate=pl.CostEstimate(
            flops=flops, transcendentals=0, bytes_accessed=bytes_accessed),
    )(x2, w1b, b1, w2b, b2, wqb, bq)

    return q[:B, :n_actions]


# -----------------------------------------------------------------------------
# Parameter init + references
# -----------------------------------------------------------------------------
def make_params(key, in_dim, n_actions, hidden=(256, 256)):
    """nn.Linear-style init (uniform +/- 1/sqrt(fan_in)); weights stored (in, out)."""
    h1, h2 = hidden
    ks = jax.random.split(key, 8)

    def lin(kw, kb, fan_in, fan_out):
        bound = 1.0 / float(fan_in) ** 0.5
        w = jax.random.uniform(kw, (fan_in, fan_out), jnp.float32, -bound, bound)
        b = jax.random.uniform(kb, (1, fan_out), jnp.float32, -bound, bound)
        return w, b

    w1, b1 = lin(ks[0], ks[1], in_dim, h1)
    w2, b2 = lin(ks[2], ks[3], h1, h2)
    wv, bv = lin(ks[4], ks[5], h2, 1)
    wa, ba = lin(ks[6], ks[7], h2, n_actions)
    return (w1, b1, w2, b2, wv, bv, wa, ba)


def reference_forward_f32(x, params):
    """Pure-JAX f32 reference matching the PyTorch module exactly."""
    w1, b1, w2, b2, wv, bv, wa, ba = params
    B = x.shape[0]
    x2 = x.astype(jnp.float32).reshape(B, -1)
    h1 = jnp.maximum(x2 @ w1 + b1, 0.0)
    h2 = jnp.maximum(h1 @ w2 + b2, 0.0)
    v = h2 @ wv + bv
    a = h2 @ wa + ba
    return v + a - jnp.mean(a, axis=1, keepdims=True)


def reference_forward_matched(x, params):
    """Pure-JAX reference with the SAME numerics as the kernel
    (folded heads, bf16 operands, f32 accumulate) for a tight check."""
    w1, b1, w2, b2, wv, bv, wa, ba = params
    wq = (wv + wa - jnp.mean(wa, axis=1, keepdims=True)).astype(jnp.bfloat16)
    bq = bv + ba - jnp.mean(ba, axis=1, keepdims=True)
    B = x.shape[0]
    xb = x.astype(jnp.float32).reshape(B, -1).astype(jnp.bfloat16)
    h1 = jnp.maximum(
        jnp.dot(xb, w1.astype(jnp.bfloat16), preferred_element_type=jnp.float32) + b1,
        0.0).astype(jnp.bfloat16)
    h2 = jnp.maximum(
        jnp.dot(h1, w2.astype(jnp.bfloat16), preferred_element_type=jnp.float32) + b2,
        0.0).astype(jnp.bfloat16)
    return jnp.dot(h2, wq, preferred_element_type=jnp.float32) + bq


if __name__ == "__main__":
    B, C, H, W = 2, 4, 16, 16
    in_dim = C * H * W            # 1024
    n_actions = 8
    hidden = (256, 256)

    key = jax.random.PRNGKey(0)
    kx, kp = jax.random.split(key)
    x = jax.random.normal(kx, (B, C, H, W), dtype=jnp.float32)
    params = make_params(kp, in_dim, n_actions, hidden)

    # One-time parameter prep (fold + bf16 cast + lane padding), outside the
    # jitted per-step forward.
    prepared = prepare_params(params, n_actions)
    prepared = jax.tree_util.tree_map(jax.block_until_ready, prepared)

    # Small-batch (inference) path: single 16-row tile.
    q = jax.block_until_ready(dueling_q_forward(x, prepared, n_actions=n_actions))
    assert q.shape == (B, n_actions)

    q_match = reference_forward_matched(x, params)
    assert jnp.allclose(q, q_match, atol=2e-3, rtol=2e-3), "mismatch vs matched reference"

    q_exact = reference_forward_f32(x, params)
    assert jnp.allclose(q, q_exact, atol=1e-1, rtol=1e-1), "mismatch vs f32 reference"

    # Multi-tile path (grid > 1, batch padding, pipelined x tiles).
    B2 = 600
    x_big = jax.random.normal(jax.random.PRNGKey(1), (B2, C, H, W), dtype=jnp.float32)
    q2 = jax.block_until_ready(
        dueling_q_forward(x_big, prepared, n_actions=n_actions, block_b=256))
    assert q2.shape == (B2, n_actions)
    q2_match = reference_forward_matched(x_big, params)
    assert jnp.allclose(q2, q2_match, atol=2e-3, rtol=2e-3), "mismatch (multi-tile)"

    print("KERNEL_OK")
</pallas_src>

<mosaic_0001>
module attributes {stable_mosaic.version = 11 : i64} {
  func.func @dueling_q_kernel(%arg0: i32, %arg1: memref<16x1024xbf16, #tpu.memory_space<vmem>>, %arg2: memref<1024x256xbf16, #tpu.memory_space<vmem>>, %arg3: memref<1x256xf32, #tpu.memory_space<vmem>>, %arg4: memref<256x256xbf16, #tpu.memory_space<vmem>>, %arg5: memref<1x256xf32, #tpu.memory_space<vmem>>, %arg6: memref<256x128xbf16, #tpu.memory_space<vmem>>, %arg7: memref<1x128xf32, #tpu.memory_space<vmem>>, %arg8: memref<16x128xf32, #tpu.memory_space<vmem>>) attributes {dimension_semantics = [#tpu.dimension_semantics<parallel>], iteration_bounds = array<i64: 1>, scalar_prefetch = 0 : i64, scratch_operands = 0 : i64, tpu.core_type = #tpu.core_type<tc>, window_params = [{transform_indices = @transform_0, window_bounds = array<i64: 16, 1024>}, {pipeline_mode = #tpu.pipeline_mode<synchronous>, transform_indices = @transform_1, window_bounds = array<i64: 1024, 256>}, {pipeline_mode = #tpu.pipeline_mode<synchronous>, transform_indices = @transform_2, window_bounds = array<i64: 1, 256>}, {pipeline_mode = #tpu.pipeline_mode<synchronous>, transform_indices = @transform_3, window_bounds = array<i64: 256, 256>}, {pipeline_mode = #tpu.pipeline_mode<synchronous>, transform_indices = @transform_4, window_bounds = array<i64: 1, 256>}, {pipeline_mode = #tpu.pipeline_mode<synchronous>, transform_indices = @transform_5, window_bounds = array<i64: 256, 128>}, {pipeline_mode = #tpu.pipeline_mode<synchronous>, transform_indices = @transform_6, window_bounds = array<i64: 1, 128>}, {transform_indices = @transform_7, window_bounds = array<i64: 16, 128>}]} {
    %c0 = arith.constant 0 : index
    %c0_0 = arith.constant 0 : index
    %0 = vector.load %arg1[%c0, %c0_0] : memref<16x1024xbf16, #tpu.memory_space<vmem>>, vector<16x1024xbf16>
    %c0_1 = arith.constant 0 : index
    %c0_2 = arith.constant 0 : index
    %1 = vector.load %arg2[%c0_1, %c0_2] : memref<1024x256xbf16, #tpu.memory_space<vmem>>, vector<1024x256xbf16>
    %cst = arith.constant dense<0.000000e+00> : vector<16x256xf32>
    %2 = tpu.matmul %0, %1, %cst {dimension_numbers = #tpu.dot_dimension_numbers<[1], [0], [0], [1], [0, 0, 1, 1], [], []>} : vector<16x1024xbf16>, vector<1024x256xbf16>, vector<16x256xf32> -> vector<16x256xf32>
    %c0_3 = arith.constant 0 : index
    %c0_4 = arith.constant 0 : index
    %3 = vector.load %arg3[%c0_3, %c0_4] : memref<1x256xf32, #tpu.memory_space<vmem>>, vector<1x256xf32>
    %4 = vector.broadcast %3 : vector<1x256xf32> to vector<16x256xf32>
    %5 = arith.addf %2, %4 : vector<16x256xf32>
    %cst_5 = arith.constant 0.000000e+00 : f32
    %6 = vector.broadcast %cst_5 : f32 to vector<16x256xf32>
    %7 = arith.maximumf %5, %6 : vector<16x256xf32>
    %8 = arith.truncf %7 : vector<16x256xf32> to vector<16x256xbf16>
    %c0_6 = arith.constant 0 : index
    %c0_7 = arith.constant 0 : index
    %9 = vector.load %arg4[%c0_6, %c0_7] : memref<256x256xbf16, #tpu.memory_space<vmem>>, vector<256x256xbf16>
    %cst_8 = arith.constant dense<0.000000e+00> : vector<16x256xf32>
    %10 = tpu.matmul %8, %9, %cst_8 {dimension_numbers = #tpu.dot_dimension_numbers<[1], [0], [0], [1], [0, 0, 1, 1], [], []>} : vector<16x256xbf16>, vector<256x256xbf16>, vector<16x256xf32> -> vector<16x256xf32>
    %c0_9 = arith.constant 0 : index
    %c0_10 = arith.constant 0 : index
    %11 = vector.load %arg5[%c0_9, %c0_10] : memref<1x256xf32, #tpu.memory_space<vmem>>, vector<1x256xf32>
    %12 = vector.broadcast %11 : vector<1x256xf32> to vector<16x256xf32>
    %13 = arith.addf %10, %12 : vector<16x256xf32>
    %cst_11 = arith.constant 0.000000e+00 : f32
    %14 = vector.broadcast %cst_11 : f32 to vector<16x256xf32>
    %15 = arith.maximumf %13, %14 : vector<16x256xf32>
    %16 = arith.truncf %15 : vector<16x256xf32> to vector<16x256xbf16>
    %c0_12 = arith.constant 0 : index
    %c0_13 = arith.constant 0 : index
    %17 = vector.load %arg6[%c0_12, %c0_13] : memref<256x128xbf16, #tpu.memory_space<vmem>>, vector<256x128xbf16>
    %cst_14 = arith.constant dense<0.000000e+00> : vector<16x128xf32>
    %18 = tpu.matmul %16, %17, %cst_14 {dimension_numbers = #tpu.dot_dimension_numbers<[1], [0], [0], [1], [0, 0, 1, 1], [], []>} : vector<16x256xbf16>, vector<256x128xbf16>, vector<16x128xf32> -> vector<16x128xf32>
    %c0_15 = arith.constant 0 : index
    %c0_16 = arith.constant 0 : index
    %19 = vector.load %arg7[%c0_15, %c0_16] : memref<1x128xf32, #tpu.memory_space<vmem>>, vector<1x128xf32>
    %20 = vector.broadcast %19 : vector<1x128xf32> to vector<16x128xf32>
    %21 = arith.addf %18, %20 : vector<16x128xf32>
    %c0_17 = arith.constant 0 : index
    %c0_18 = arith.constant 0 : index
    %22 = vector.load %arg8[%c0_17, %c0_18] : memref<16x128xf32, #tpu.memory_space<vmem>>, vector<16x128xf32>
    tpu.vector_store %arg8[%c0_17, %c0_18], %21 {strides = array<i32>} : memref<16x128xf32, #tpu.memory_space<vmem>>, vector<16x128xf32>,
    return
  }
  func.func @transform_0(%arg0: i32) -> (i32, i32) {
    %c0_i32 = arith.constant 0 : i32
    %c0_i32_0 = arith.constant 0 : i32
    return %arg0, %c0_i32 : i32, i32
  }
  func.func @transform_1(%arg0: i32) -> (i32, i32) {
    %c0_i32 = arith.constant 0 : i32
    %c0_i32_0 = arith.constant 0 : i32
    %c0_i32_1 = arith.constant 0 : i32
    return %c0_i32, %c0_i32_0 : i32, i32
  }
  func.func @transform_2(%arg0: i32) -> (i32, i32) {
    %c0_i32 = arith.constant 0 : i32
    %c0_i32_0 = arith.constant 0 : i32
    %c0_i32_1 = arith.constant 0 : i32
    return %c0_i32, %c0_i32_0 : i32, i32
  }
  func.func @transform_3(%arg0: i32) -> (i32, i32) {
    %c0_i32 = arith.constant 0 : i32
    %c0_i32_0 = arith.constant 0 : i32
    %c0_i32_1 = arith.constant 0 : i32
    return %c0_i32, %c0_i32_0 : i32, i32
  }
  func.func @transform_4(%arg0: i32) -> (i32, i32) {
    %c0_i32 = arith.constant 0 : i32
    %c0_i32_0 = arith.constant 0 : i32
    %c0_i32_1 = arith.constant 0 : i32
    return %c0_i32, %c0_i32_0 : i32, i32
  }
  func.func @transform_5(%arg0: i32) -> (i32, i32) {
    %c0_i32 = arith.constant 0 : i32
    %c0_i32_0 = arith.constant 0 : i32
    %c0_i32_1 = arith.constant 0 : i32
    return %c0_i32, %c0_i32_0 : i32, i32
  }
  func.func @transform_6(%arg0: i32) -> (i32, i32) {
    %c0_i32 = arith.constant 0 : i32
    %c0_i32_0 = arith.constant 0 : i32
    %c0_i32_1 = arith.constant 0 : i32
    return %c0_i32, %c0_i32_0 : i32, i32
  }
  func.func @transform_7(%arg0: i32) -> (i32, i32) {
    %c0_i32 = arith.constant 0 : i32
    %c0_i32_0 = arith.constant 0 : i32
    return %arg0, %c0_i32 : i32, i32
  }
}

</mosaic_0001>

<bundles_post_ra>
// kernel: dueling_q_forward.1
= control target key start
LH: loop header
LB: loop body
LE: loop exit
PB: predicated region body
PF: predicated region fallthrough
CT: control target
= control target key end

     0   :  { %12 = vsyncpa [#allocation3], 0  ;;  %s2260_s0 = inlined_call_operand.vmem [shape: bf16[16,1024], index: 0, kind: input, shape index: {}]   ;;  %s2261_s1 = inlined_call_operand.hbm [shape: bf16[1024,256], index: 1, kind: input, shape index: {}]   ;;  %s2262_s2 = inlined_call_operand.vmem [shape: f32[1,256], index: 2, kind: input, shape index: {}]   ;;  %s2263_s3 = inlined_call_operand.vmem [shape: bf16[256,256], index: 3, kind: input, shape index: {}]   ;;  %s2264_s4 = inlined_call_operand.vmem [shape: f32[1,256], index: 4, kind: input, shape index: {}]   ;;  %s2265_s5 = inlined_call_operand.hbm [shape: bf16[256,128], index: 5, kind: input, shape index: {}]   ;;  %s2266_s6 = inlined_call_operand.vmem [shape: f32[1,128], index: 6, kind: input, shape index: {}]   ;;  %s2267_s7 = inlined_call_operand.vmem [shape: f32[16,128], index: 7, kind: output, shape index: {}]  }
   0x1   :  { %13 = vsyncpa [#allocation5], 0  ;;  %s2031_s24 = smov [#allocation2]   ;;  %s1983_s28 = scalar_lea.hbm %s2261_s1, 16384 }
   0x2   :  { %s21_s25 = sshll.u32 %s2031_s24, 4  ;;  %p1984_p0 = scmp.ne.s32.totalorder %s2261_s1, %s1983_s28  ;;  %s22_s25 = int_to_ptr.vmem [resolvable:$true] %s21_s25 }
   0x3   :  { %p1987_p1 = scmp.lt.u32.totalorder %s1983_s28, %s2261_s1 }
   0x5   :  { %p1989_p2 = pnand %p1987_p1, %p1984_p0 }
   0x7   :  { %1992 = shalt.err (!%p1989_p2)
}
   0x8   :  { %s1993_s10 = scalar_lea.vmem %s22_s25, 16384  ;;  %p1998_p4 = scmp.lt.s32.totalorder %s22_s25, %s22_s25 }
   0x9   :  { %p1994_p3 = scmp.ne.s32.totalorder %s22_s25, %s1993_s10  ;;  %p1999_p5 = scmp.lt.s32.totalorder %s1993_s10, %s1993_s10 }
   0xb   :  { %p2000_p6 = por %p1999_p5, %p1998_p4 }
   0xd   :  { %p2001_p7 = pnand %p2000_p6, %p1994_p3 }
   0xf   :  { %2004 = shalt.err (!%p2001_p7)
}
  0x10   :  { %s2032_s11 = smov 128   ;;  %s2033_s12 = smov 8  }
  0x11   :  { %27 = dma.hbm_to_vmem [thread:$0]  %s2261_s1, 16384, %s22_s25, [#allocation3], %s2032_s11, %s2032_s11, %s2033_s12  }
  0x12   :  { %s2034_s15 = smov [#allocation4]   ;;  %s2005_s19 = scalar_lea.hbm %s2265_s5, 2048 }
  0x13   :  { %s39_s16 = sshll.u32 %s2034_s15, 4  ;;  %p2006_p8 = scmp.ne.s32.totalorder %s2265_s5, %s2005_s19  ;;  %s40_s16 = int_to_ptr.vmem [resolvable:$true] %s39_s16 }
  0x14   :  { %p2009_p9 = scmp.lt.u32.totalorder %s2005_s19, %s2265_s5 }
  0x16   :  { %p2011_p10 = pnand %p2009_p9, %p2006_p8 }
  0x18   :  { %2014 = shalt.err (!%p2011_p10)
}
  0x19   :  { %s2015_s24 = scalar_lea.vmem %s40_s16, 2048  ;;  %p2020_p12 = scmp.lt.s32.totalorder %s40_s16, %s40_s16 }
  0x1a   :  { %p2016_p11 = scmp.ne.s32.totalorder %s40_s16, %s2015_s24  ;;  %p2021_p13 = scmp.lt.s32.totalorder %s2015_s24, %s2015_s24 }
  0x1c   :  { %p2022_p0 = por %p2021_p13, %p2020_p12 }
  0x1e   :  { %p2023_p1 = pnand %p2022_p0, %p2016_p11 }
  0x20   :  { %2026 = shalt.err (!%p2023_p1)
}
  0x21   :  { %s2035_s1 = smov 64   ;;  %s2036_s25 = smov 4  }
  0x22   :  { %45 = dma.hbm_to_vmem [thread:$0]  %s2265_s5, 2048, %s40_s16, [#allocation5], %s2035_s1, %s2035_s1, %s2036_s25  }
  0x23   :  { %2027 = dma.done.wait [#allocation3], 16384  }
  0x24   :  { %2028 = vsyncadd [#allocation3], 4294950912 }
  0x25   :  { %2029 = dma.done.wait [#allocation5], 2048  }
  0x26   :  { %2030 = vsyncadd [#allocation5], 4294965248  ;;  %v1727_v0 = vld [vmem:[#allocation2 + $0x104] ss:$8 sps:$4 sm:$0xff]   ;;  %v1729_v1 = vld [vmem:[#allocation2 + $0x100] ss:$8 sps:$4 sm:$0xff]  }
  0x27   :  { %926 = vmatprep.subr.bf16.mxu0 %v1727_v0  ;;  %v1730_v2 = vld [vmem:[#allocation2 + $0x114] ss:$8 sps:$4 sm:$0xff]   ;;  %v1732_v3 = vld [vmem:[#allocation2 + $0x110] ss:$8 sps:$4 sm:$0xff]   ;;  %v1733_v4 = vld [vmem:[#allocation2 + $0x124] ss:$8 sps:$4 sm:$0xff]  }
  0x28   :  { %927 = vmatpush1.bf16.msra.mxu0 %v1729_v1  ;;  %v1735_v5 = vld [vmem:[#allocation2 + $0x120] ss:$8 sps:$4 sm:$0xff]   ;;  %v1736_v6 = vld [vmem:[#allocation2 + $0x134] ss:$8 sps:$4 sm:$0xff]   ;;  %v1738_v7 = vld [vmem:[#allocation2 + $0x130] ss:$8 sps:$4 sm:$0xff]  }
  0x29   :  { %928 = vmatprep.subr.bf16.mxu0 %v1730_v2  ;;  %v1739_v8 = vld [vmem:[#allocation2 + $0x144] ss:$8 sps:$4 sm:$0xff]   ;;  %v1741_v9 = vld [vmem:[#allocation2 + $0x140] ss:$8 sps:$4 sm:$0xff]   ;;  %v1742_v10 = vld [vmem:[#allocation2 + $0x154] ss:$8 sps:$4 sm:$0xff]  }
  0x2a   :  { %v1744_v11 = vld [vmem:[#allocation2 + $0x150] ss:$8 sps:$4 sm:$0xff]   ;;  %v1745_v12 = vld [vmem:[#allocation2 + $0x164] ss:$8 sps:$4 sm:$0xff]   ;;  %v1747_v16 = vld [vmem:[#allocation2 + $0x160] ss:$8 sps:$4 sm:$0xff]  }
  0x2b   :  { %v2104_v13 = vld [vmem:[%s2260_s0 + $0x8] sm:$0xff]  ;;  %v1748_v17 = vld [vmem:[#allocation2 + $0x174] ss:$8 sps:$4 sm:$0xff]   ;;  %v1750_v18 = vld [vmem:[#allocation2 + $0x170] ss:$8 sps:$4 sm:$0xff]  }
  0x2c   :  { %929 = vmatpush1.bf16.msra.mxu0 %v1732_v3  ;;  %v2109_v14 = vld [vmem:[%s2260_s0 + $0x28] sm:$0xff]  ;;  %v1754_v21 = vld [vmem:[#allocation2 + $0x194] ss:$8 sps:$4 sm:$0xff]   ;;  %v1756_v22 = vld [vmem:[#allocation2 + $0x190] ss:$8 sps:$4 sm:$0xff]  }
  0x2d   :  { %930 = vmatprep.subr.bf16.mxu0 %v1733_v4  ;;  %v1501_v15 = vcombine.high %v2104_v13, %v2109_v14  ;;  %v1751_v19 = vld [vmem:[#allocation2 + $0x184] ss:$8 sps:$4 sm:$0xff]   ;;  %v1753_v20 = vld [vmem:[#allocation2 + $0x180] ss:$8 sps:$4 sm:$0xff]   ;;  %v1760_v25 = vld [vmem:[#allocation2 + $0x1b4] ss:$8 sps:$4 sm:$0xff]   ;;  %v1500_v50 = vcombine.low %v2104_v13, %v2109_v14 }
  0x2e   :  { %v1757_v23 = vld [vmem:[#allocation2 + $0x1a4] ss:$8 sps:$4 sm:$0xff]   ;;  %v1759_v24 = vld [vmem:[#allocation2 + $0x1a0] ss:$8 sps:$4 sm:$0xff]   ;;  %v1762_v26 = vld [vmem:[#allocation2 + $0x1b0] ss:$8 sps:$4 sm:$0xff]  }
  0x2f   :  { %958 = vmatprep.mubr.bf16.mxu0 %v1501_v15  ;;  %v1820_v27 = vld [vmem:[#allocation2 + $0x4] ss:$8 sps:$4 sm:$0xff]   ;;  %v1822_v28 = vld [vmem:[#allocation2] ss:$8 sps:$4 sm:$0xff]   ;;  %v1826_v30 = vld [vmem:[#allocation2 + $0x14] ss:$8 sps:$4 sm:$0xff]  }
  0x30   :  { %931 = vmatpush1.bf16.msra.mxu0 %v1735_v5  ;;  %v1763_v29 = vld [vmem:[#allocation2 + $0x1c4] ss:$8 sps:$4 sm:$0xff]   ;;  %883 = vmatprep.subr.bf16.mxu1 %v1820_v27  ;;  %v1828_v31 = vld [vmem:[#allocation2 + $0x10] ss:$8 sps:$4 sm:$0xff]   ;;  %v1765_v32 = vld [vmem:[#allocation2 + $0x1c0] ss:$8 sps:$4 sm:$0xff]  }
  0x31   :  { %932 = vmatprep.subr.bf16.mxu0 %v1736_v6  ;;  %884 = vmatpush1.bf16.msra.mxu1 %v1822_v28  ;;  %v1766_v33 = vld [vmem:[#allocation2 + $0x1d4] ss:$8 sps:$4 sm:$0xff]   ;;  %v1832_v34 = vld [vmem:[#allocation2 + $0x24] ss:$8 sps:$4 sm:$0xff]   ;;  %v1834_v35 = vld [vmem:[#allocation2 + $0x20] ss:$8 sps:$4 sm:$0xff]  }
  0x32   :  { %885 = vmatprep.subr.bf16.mxu1 %v1826_v30  ;;  %v1768_v36 = vld [vmem:[#allocation2 + $0x1d0] ss:$8 sps:$4 sm:$0xff]   ;;  %v1838_v37 = vld [vmem:[#allocation2 + $0x34] ss:$8 sps:$4 sm:$0xff]   ;;  %v1769_v38 = vld [vmem:[#allocation2 + $0x1e4] ss:$8 sps:$4 sm:$0xff]  }
  0x33   :  { %v1840_v39 = vld [vmem:[#allocation2 + $0x30] ss:$8 sps:$4 sm:$0xff]   ;;  %v1844_v40 = vld [vmem:[#allocation2 + $0x44] ss:$8 sps:$4 sm:$0xff]   ;;  %v1771_v41 = vld [vmem:[#allocation2 + $0x1e0] ss:$8 sps:$4 sm:$0xff]  }
  0x34   :  { %933 = vmatpush1.bf16.msra.mxu0 %v1738_v7  ;;  %v1772_v42 = vld [vmem:[#allocation2 + $0x1f4] ss:$8 sps:$4 sm:$0xff]   ;;  %v1846_v43 = vld [vmem:[#allocation2 + $0x40] ss:$8 sps:$4 sm:$0xff]   ;;  %v1774_v44 = vld [vmem:[#allocation2 + $0x1f0] ss:$8 sps:$4 sm:$0xff]  }
  0x35   :  { %934 = vmatprep.subr.bf16.mxu0 %v1739_v8  ;;  %886 = vmatpush1.bf16.msra.mxu1 %v1828_v31  ;;  %v1850_v45 = vld [vmem:[#allocation2 + $0x54] ss:$8 sps:$4 sm:$0xff]   ;;  %v1777_v46 = vld [vmem:[#allocation2 + $0x204] ss:$8 sps:$4 sm:$0xff]   ;;  %v1852_v49 = vld [vmem:[#allocation2 + $0x50] ss:$8 sps:$4 sm:$0xff]  }
  0x36   :  { %887 = vmatprep.subr.bf16.mxu1 %v1832_v34  ;;  %v2116_v47 = vld [vmem:[%s2260_s0 + $0x10] sm:$0xff]  ;;  %v1856_v51 = vld [vmem:[#allocation2 + $0x64] ss:$8 sps:$4 sm:$0xff]   ;;  %v1775_v52 = vld [vmem:[#allocation2 + $0x200] ss:$8 sps:$4 sm:$0xff]  }
  0x37   :  { %v2121_v48 = vld [vmem:[%s2260_s0 + $0x30] sm:$0xff]  ;;  %v1858_v55 = vld [vmem:[#allocation2 + $0x60] ss:$8 sps:$4 sm:$0xff]   ;;  %v1783_v58 = vld [vmem:[#allocation2 + $0x224] ss:$8 sps:$4 sm:$0xff]  }
  0x38   :  { %935 = vmatpush1.bf16.msra.mxu0 %v1741_v9  ;;  %v1503_v53 = vcombine.high %v2116_v47, %v2121_v48  ;;  %v1780_v54 = vld [vmem:[#allocation2 + $0x214] ss:$8 sps:$4 sm:$0xff]   ;;  %v1778_v57 = vld [vmem:[#allocation2 + $0x210] ss:$8 sps:$4 sm:$0xff]   ;;  %v1868_v60 = vld [vmem:[#allocation2 + $0x84] ss:$8 sps:$4 sm:$0xff]  }
  0x39   :  { %936 = vmatprep.subr.bf16.mxu0 %v1742_v10  ;;  %888 = vmatpush1.bf16.msra.mxu1 %v1834_v35  ;;  %v1862_v56 = vld [vmem:[#allocation2 + $0x74] ss:$8 sps:$4 sm:$0xff]   ;;  %v1864_v59 = vld [vmem:[#allocation2 + $0x70] ss:$8 sps:$4 sm:$0xff]   ;;  %v1781_v61 = vld [vmem:[#allocation2 + $0x220] ss:$8 sps:$4 sm:$0xff]  }
  0x3a   :  { %889 = vmatprep.subr.bf16.mxu1 %v1838_v37  ;;  %v1786_v62 = vld [vmem:[#allocation2 + $0x234] ss:$8 sps:$4 sm:$0xff]   ;;  %v1870_v63 = vld [vmem:[#allocation2 + $0x80] ss:$8 sps:$4 sm:$0xff]   ;;  %v1784_v1 = vld [vmem:[#allocation2 + $0x230] ss:$8 sps:$4 sm:$0xff]  }
  0x3b   :  { %v1874_v0 = vld [vmem:[#allocation2 + $0x94] ss:$8 sps:$4 sm:$0xff]   ;;  %v1789_v2 = vld [vmem:[#allocation2 + $0x244] ss:$8 sps:$4 sm:$0xff]   ;;  %v1876_v3 = vld [vmem:[#allocation2 + $0x90] ss:$8 sps:$4 sm:$0xff]  }
  0x3c   :  { %937 = vmatpush1.bf16.msra.mxu0 %v1744_v11  ;;  %v1880_v4 = vld [vmem:[#allocation2 + $0xa4] ss:$8 sps:$4 sm:$0xff]   ;;  %v1787_v5 = vld [vmem:[#allocation2 + $0x240] ss:$8 sps:$4 sm:$0xff]   ;;  %v1792_v6 = vld [vmem:[#allocation2 + $0x254] ss:$8 sps:$4 sm:$0xff]  }
  0x3d   :  { %938 = vmatprep.subr.bf16.mxu0 %v1745_v12  ;;  %890 = vmatpush1.bf16.msra.mxu1 %v1840_v39  ;;  %v1882_v7 = vld [vmem:[#allocation2 + $0xa0] ss:$8 sps:$4 sm:$0xff]   ;;  %v1886_v8 = vld [vmem:[#allocation2 + $0xb4] ss:$8 sps:$4 sm:$0xff]   ;;  %v1790_v9 = vld [vmem:[#allocation2 + $0x250] ss:$8 sps:$4 sm:$0xff]  }
  0x3e   :  { %891 = vmatprep.subr.bf16.mxu1 %v1844_v40  ;;  %v1795_v10 = vld [vmem:[#allocation2 + $0x264] ss:$8 sps:$4 sm:$0xff]   ;;  %v1888_v11 = vld [vmem:[#allocation2 + $0xb0] ss:$8 sps:$4 sm:$0xff]   ;;  %v1910_v27 = vld [vmem:[#allocation2 + $0xf4] ss:$8 sps:$4 sm:$0xff]  }
  0x3f   :  { %v55_v12 = vld [vmem:[%s2260_s0] sm:$0xff]  ;;  %v1802_v28 = vld [vmem:[#allocation2 + $0x290] ss:$8 sps:$4 sm:$0xff]  }
  0x40   :  { %939 = vmatpush1.bf16.msra.mxu0 %v1747_v16  ;;  %v59_v13 = vld [vmem:[%s2260_s0 + $0x20] sm:$0xff]  ;;  %v1912_v30 = vld [vmem:[#allocation2 + $0xf0] ss:$8 sps:$4 sm:$0xff]  }
  0x41   :  { %940 = vmatprep.subr.bf16.mxu0 %v1748_v17  ;;  %892 = vmatpush1.bf16.msra.mxu1 %v1846_v43  ;;  %v1892_v14 = vld [vmem:[#allocation2 + $0xc4] ss:$8 sps:$4 sm:$0xff]   ;;  %v1499_v15 = vcombine.high %v55_v12, %v59_v13  ;;  %v1793_v16 = vld [vmem:[#allocation2 + $0x260] ss:$8 sps:$4 sm:$0xff]   ;;  %v1798_v17 = vld [vmem:[#allocation2 + $0x274] ss:$8 sps:$4 sm:$0xff]   ;;  %v1498_v35 = vcombine.low %v55_v12, %v59_v13 }
  0x42   :  { %893 = vmatprep.subr.bf16.mxu1 %v1850_v45  ;;  %v1805_v31 = vld [vmem:[#allocation2 + $0x2a0] ss:$8 sps:$4 sm:$0xff]   ;;  %v1808_v37 = vld [vmem:[#allocation2 + $0x2b0] ss:$8 sps:$4 sm:$0xff]   ;;  %v1927_v40 = vld [vmem:[%s2263_s3 + $0x24] ss:$8 sps:$4 sm:$0xff]  }
  0x43   :  { %915 = vmatprep.mubr.bf16.mxu1 %v1499_v15  ;;  %v1919_v34 = vld [vmem:[%s2263_s3] ss:$8 sps:$4 sm:$0xff]   ;;  %v1922_v39 = vld [vmem:[%s2263_s3 + $0x10] ss:$8 sps:$4 sm:$0xff]   ;;  %v1951_v12 = vld [vmem:[%s2263_s3 + $0xa4] ss:$8 sps:$4 sm:$0xff]  }
  0x44   :  { %941 = vmatpush1.bf16.msra.mxu0 %v1750_v18  ;;  %v1894_v18 = vld [vmem:[#allocation2 + $0xc0] ss:$8 sps:$4 sm:$0xff]   ;;  %v1814_v45 = vld [vmem:[#allocation2 + $0x2d0] ss:$8 sps:$4 sm:$0xff]  }
  0x45   :  { %942 = vmatprep.subr.bf16.mxu0 %v1751_v19  ;;  %894 = vmatpush1.bf16.msra.mxu1 %v1852_v49  ;;  %v1898_v19 = vld [vmem:[#allocation2 + $0xd4] ss:$8 sps:$4 sm:$0xff]   ;;  %v1925_v43 = vld [vmem:[%s2263_s3 + $0x20] ss:$8 sps:$4 sm:$0xff]   ;;  %v1928_v49 = vld [vmem:[%s2263_s3 + $0x30] ss:$8 sps:$4 sm:$0xff]  }
  0x46   :  { %895 = vmatprep.subr.bf16.mxu1 %v1856_v51  ;;  %v1817_v51 = vld [vmem:[#allocation2 + $0x2e0] ss:$8 sps:$4 sm:$0xff]  }
  0x47   :  { %v1853_v13 = vld [vmem:[#allocation2 + $0x340] ss:$8 sps:$4 sm:$0xff]  }
  0x48   :  { %943 = vmatpush1.bf16.msra.mxu0 %v1753_v20  ;;  %v1796_v20 = vld [vmem:[#allocation2 + $0x270] ss:$8 sps:$4 sm:$0xff]   ;;  %v1949_v15 = vld [vmem:[%s2263_s3 + $0xa0] ss:$8 sps:$4 sm:$0xff]  }
  0x49   :  { %944 = vmatprep.subr.bf16.mxu0 %v1754_v21  ;;  %896 = vmatpush1.bf16.msra.mxu1 %v1858_v55  ;;  %v1801_v21 = vld [vmem:[#allocation2 + $0x284] ss:$8 sps:$4 sm:$0xff]   ;;  %v1823_v55 = vld [vmem:[#allocation2 + $0x2f0] ss:$8 sps:$4 sm:$0xff]  }
  0x4a   :  { %897 = vmatprep.subr.bf16.mxu1 %v1862_v56  ;;  %v1831_v56 = vld [vmem:[#allocation2 + $0x304] ss:$8 sps:$4 sm:$0xff]  }
  0x4c   :  { %945 = vmatpush1.bf16.msra.mxu0 %v1756_v22  ;;  %v1900_v22 = vld [vmem:[#allocation2 + $0xd0] ss:$8 sps:$4 sm:$0xff]  }
  0x4d   :  { %946 = vmatprep.subr.bf16.mxu0 %v1757_v23  ;;  %898 = vmatpush1.bf16.msra.mxu1 %v1864_v59  ;;  %v1904_v23 = vld [vmem:[#allocation2 + $0xe4] ss:$8 sps:$4 sm:$0xff]   ;;  %v1934_v59 = vld [vmem:[%s2263_s3 + $0x50] ss:$8 sps:$4 sm:$0xff]  }
  0x4e   :  { %899 = vmatprep.subr.bf16.mxu1 %v1868_v60  ;;  %v1502_v60 = vcombine.low %v2116_v47, %v2121_v48  ;;  %v1942_v47 = vld [vmem:[%s2263_s3 + $0x74] ss:$8 sps:$4 sm:$0xff]   ;;  %v1835_v48 = vld [vmem:[#allocation2 + $0x310] ss:$8 sps:$4 sm:$0xff]  }
  0x50   :  { %947 = vmatpush1.bf16.msra.mxu0 %v1759_v24  ;;  %v1799_v24 = vld [vmem:[#allocation2 + $0x280] ss:$8 sps:$4 sm:$0xff]  }
  0x51   :  { %948 = vmatprep.subr.bf16.mxu0 %v1760_v25  ;;  %900 = vmatpush1.bf16.msra.mxu1 %v1870_v63  ;;  %v1804_v25 = vld [vmem:[#allocation2 + $0x294] ss:$8 sps:$4 sm:$0xff]  }
  0x52   :  { %901 = vmatprep.subr.bf16.mxu1 %v1874_v0  ;;  %v1837_v0 = vld [vmem:[#allocation2 + $0x314] ss:$8 sps:$4 sm:$0xff]  }
  0x54   :  { %949 = vmatpush1.bf16.msra.mxu0 %v1762_v26  ;;  %v1906_v26 = vld [vmem:[#allocation2 + $0xe0] ss:$8 sps:$4 sm:$0xff]  }
  0x55   :  { %950 = vmatprep.subr.bf16.mxu0 %v1763_v29  ;;  %902 = vmatpush1.bf16.msra.mxu1 %v1876_v3  ;;  %v1807_v29 = vld [vmem:[#allocation2 + $0x2a4] ss:$8 sps:$4 sm:$0xff]   ;;  %v1940_v3 = vld [vmem:[%s2263_s3 + $0x70] ss:$8 sps:$4 sm:$0xff]  }
  0x56   :  { %903 = vmatprep.subr.bf16.mxu1 %v1880_v4  ;;  %v1945_v4 = vld [vmem:[%s2263_s3 + $0x84] ss:$8 sps:$4 sm:$0xff]  }
  0x58   :  { %951 = vmatpush1.bf16.msra.mxu0 %v1765_v32  ;;  %v1921_v32 = vld [vmem:[%s2263_s3 + $0x4] ss:$8 sps:$4 sm:$0xff]  }
  0x59   :  { %952 = vmatprep.subr.bf16.mxu0 %v1766_v33  ;;  %904 = vmatpush1.bf16.msra.mxu1 %v1882_v7  ;;  %v1810_v33 = vld [vmem:[#allocation2 + $0x2b4] ss:$8 sps:$4 sm:$0xff]   ;;  %v1943_v7 = vld [vmem:[%s2263_s3 + $0x80] ss:$8 sps:$4 sm:$0xff]  }
  0x5a   :  { %905 = vmatprep.subr.bf16.mxu1 %v1886_v8  ;;  %v1948_v8 = vld [vmem:[%s2263_s3 + $0x94] ss:$8 sps:$4 sm:$0xff]  }
  0x5c   :  { %953 = vmatpush1.bf16.msra.mxu0 %v1768_v36  ;;  %v1924_v36 = vld [vmem:[%s2263_s3 + $0x14] ss:$8 sps:$4 sm:$0xff]  }
  0x5d   :  { %954 = vmatprep.subr.bf16.mxu0 %v1769_v38  ;;  %906 = vmatpush1.bf16.msra.mxu1 %v1888_v11  ;;  %v1813_v38 = vld [vmem:[#allocation2 + $0x2c4] ss:$8 sps:$4 sm:$0xff]   ;;  %v1946_v11 = vld [vmem:[%s2263_s3 + $0x90] ss:$8 sps:$4 sm:$0xff]  }
  0x5e   :  { %907 = vmatprep.subr.bf16.mxu1 %v1892_v14  ;;  %v1861_v14 = vld [vmem:[#allocation2 + $0x354] ss:$8 sps:$4 sm:$0xff]  }
  0x60   :  { %955 = vmatpush1.bf16.msra.mxu0 %v1771_v41  ;;  %v1811_v41 = vld [vmem:[#allocation2 + $0x2c0] ss:$8 sps:$4 sm:$0xff]  }
  0x61   :  { %956 = vmatprep.subr.bf16.mxu0 %v1772_v42  ;;  %908 = vmatpush1.bf16.msra.mxu1 %v1894_v18  ;;  %v1816_v42 = vld [vmem:[#allocation2 + $0x2d4] ss:$8 sps:$4 sm:$0xff]   ;;  %v1867_v18 = vld [vmem:[#allocation2 + $0x364] ss:$8 sps:$4 sm:$0xff]  }
  0x62   :  { %909 = vmatprep.subr.bf16.mxu1 %v1898_v19  ;;  %v1952_v19 = vld [vmem:[%s2263_s3 + $0xb0] ss:$8 sps:$4 sm:$0xff]  }
  0x64   :  { %957 = vmatpush1.bf16.msra.mxu0 %v1774_v44  ;;  %v1930_v44 = vld [vmem:[%s2263_s3 + $0x34] ss:$8 sps:$4 sm:$0xff]  }
  0x65   :  { %969 = vmatprep.subr.bf16.mxu0 %v1777_v46  ;;  %910 = vmatpush1.bf16.msra.mxu1 %v1900_v22  ;;  %v1819_v46 = vld [vmem:[#allocation2 + $0x2e4] ss:$8 sps:$4 sm:$0xff]   ;;  %v1871_v22 = vld [vmem:[#allocation2 + $0x370] ss:$8 sps:$4 sm:$0xff]  }
  0x66   :  { %911 = vmatprep.subr.bf16.mxu1 %v1904_v23  ;;  %v1879_v23 = vld [vmem:[#allocation2 + $0x384] ss:$8 sps:$4 sm:$0xff]  }
  0x67   :  { %959 = vmatmul.mubr.bf16.vlgmr.msra.gmra.mrb[0].mxu0 %v1500_v50  ;;  %v1933_v50 = vld [vmem:[%s2263_s3 + $0x44] ss:$8 sps:$4 sm:$0xff]  }
  0x68   :  { %970 = vmatpush1.bf16.msra.mxu0 %v1775_v52  ;;  %1001 = vmatprep.mubr.bf16.mxu0 %v1503_v53  ;;  %v1825_v52 = vld [vmem:[#allocation2 + $0x2f4] ss:$8 sps:$4 sm:$0xff]   ;;  %v1931_v53 = vld [vmem:[%s2263_s3 + $0x40] ss:$8 sps:$4 sm:$0xff]  }
  0x69   :  { %971 = vmatprep.subr.bf16.mxu0 %v1780_v54  ;;  %912 = vmatpush1.bf16.msra.mxu1 %v1906_v26  ;;  %v1936_v54 = vld [vmem:[%s2263_s3 + $0x54] ss:$8 sps:$4 sm:$0xff]   ;;  %v1883_v26 = vld [vmem:[#allocation2 + $0x390] ss:$8 sps:$4 sm:$0xff]  }
  0x6a   :  { %913 = vmatprep.subr.bf16.mxu1 %v1910_v27  ;;  %v1891_v27 = vld [vmem:[#allocation2 + $0x3a4] ss:$8 sps:$4 sm:$0xff]  }
  0x6c   :  { %972 = vmatpush1.bf16.msra.mxu0 %v1778_v57  ;;  %v2169_v57 = vld [vmem:[%s2260_s0 + $0x18] sm:$0xff] }
  0x6d   :  { %973 = vmatprep.subr.bf16.mxu0 %v1783_v58  ;;  %914 = vmatpush1.bf16.msra.mxu1 %v1912_v30  ;;  %v2174_v58 = vld [vmem:[%s2260_s0 + $0x38] sm:$0xff] }
  0x6e   :  { %1265 = vmatprep.subr.bf16.mxu1 %v1921_v32  ;;  %v1505_v63 = vcombine.high %v2169_v57, %v2174_v58  ;;  %v1895_v30 = vld [vmem:[#allocation2 + $0x3b0] ss:$8 sps:$4 sm:$0xff]   ;;  %v1901_v32 = vld [vmem:[#allocation2 + $0x3c0] ss:$8 sps:$4 sm:$0xff]  }
  0x70   :  { %974 = vmatpush1.bf16.msra.mxu0 %v1781_v61  ;;  %916 = vmatmul.mubr.bf16.vlgmr.msra.gmra.mrb[0].mxu1 %v1498_v35  ;;  %v1939_v61 = vld [vmem:[%s2263_s3 + $0x64] ss:$8 sps:$4 sm:$0xff]  }
  0x71   :  { %975 = vmatprep.subr.bf16.mxu0 %v1786_v62  ;;  %1266 = vmatpush1.bf16.msra.mxu1 %v1919_v34  ;;  %v1829_v62 = vld [vmem:[#allocation2 + $0x300] ss:$8 sps:$4 sm:$0xff]   ;;  %v1907_v34 = vld [vmem:[#allocation2 + $0x3d0] ss:$8 sps:$4 sm:$0xff]   ;;  %v1915_v35 = vld [vmem:[#allocation2 + $0x3e4] ss:$8 sps:$4 sm:$0xff]  }
  0x72   :  { %1267 = vmatprep.subr.bf16.mxu1 %v1924_v36  ;;  %v1913_v36 = vld [vmem:[#allocation2 + $0x3e0] ss:$8 sps:$4 sm:$0xff]  }
  0x74   :  { %976 = vmatpush1.bf16.msra.mxu0 %v1784_v1  ;;  %v1937_v1 = vld [vmem:[%s2263_s3 + $0x60] ss:$8 sps:$4 sm:$0xff]  }
  0x75   :  { %977 = vmatprep.subr.bf16.mxu0 %v1789_v2  ;;  %1268 = vmatpush1.bf16.msra.mxu1 %v1922_v39  ;;  %v1843_v2 = vld [vmem:[#allocation2 + $0x324] ss:$8 sps:$4 sm:$0xff]   ;;  %v1504_v39 = vcombine.low %v2169_v57, %v2174_v58  ;;  %v191_v58 = vld [vmem:[%s2262_s2] sm:$0x3] }
  0x76   :  { %1269 = vmatprep.subr.bf16.mxu1 %v1927_v40  ;;  %v1955_v40 = vld [vmem:[%s2263_s3 + $0xc0] ss:$8 sps:$4 sm:$0xff]  }
  0x78   :  { %978 = vmatpush1.bf16.msra.mxu0 %v1787_v5  ;;  %v1841_v5 = vld [vmem:[#allocation2 + $0x320] ss:$8 sps:$4 sm:$0xff]  }
  0x79   :  { %979 = vmatprep.subr.bf16.mxu0 %v1792_v6  ;;  %1270 = vmatpush1.bf16.msra.mxu1 %v1925_v43  ;;  %v1849_v6 = vld [vmem:[#allocation2 + $0x334] ss:$8 sps:$4 sm:$0xff]  }
  0x7a   :  { %1271 = vmatprep.subr.bf16.mxu1 %v1930_v44  ;;  %v1960_v43 = vld [vmem:[%s2263_s3 + $0xd4] ss:$8 sps:$4 sm:$0xff]   ;;  %v1963_v44 = vld [vmem:[%s2263_s3 + $0xe4] ss:$8 sps:$4 sm:$0xff]  }
  0x7c   :  { %980 = vmatpush1.bf16.msra.mxu0 %v1790_v9  ;;  %v1847_v9 = vld [vmem:[#allocation2 + $0x330] ss:$8 sps:$4 sm:$0xff]  }
  0x7d   :  { %981 = vmatprep.subr.bf16.mxu0 %v1795_v10  ;;  %1272 = vmatpush1.bf16.msra.mxu1 %v1928_v49  ;;  %v1855_v10 = vld [vmem:[#allocation2 + $0x344] ss:$8 sps:$4 sm:$0xff]   ;;  %v1964_v49 = vld [vmem:[%s2263_s3 + $0xf0] ss:$8 sps:$4 sm:$0xff]  }
  0x7e   :  { %1273 = vmatprep.subr.bf16.mxu1 %v1933_v50  ;;  %v1967_v50 = vld [vmem:[#allocation4 + $0x40] sm:$0xff]  }
  0x80   :  { %982 = vmatpush1.bf16.msra.mxu0 %v1793_v16  ;;  %v1954_v16 = vld [vmem:[%s2263_s3 + $0xb4] ss:$8 sps:$4 sm:$0xff]  }
  0x81   :  { %983 = vmatprep.subr.bf16.mxu0 %v1798_v17  ;;  %1274 = vmatpush1.bf16.msra.mxu1 %v1931_v53  ;;  %v1859_v17 = vld [vmem:[#allocation2 + $0x350] ss:$8 sps:$4 sm:$0xff]  }
  0x82   :  { %1275 = vmatprep.subr.bf16.mxu1 %v1936_v54 }
  0x84   :  { %984 = vmatpush1.bf16.msra.mxu0 %v1796_v20  ;;  %v1865_v20 = vld [vmem:[#allocation2 + $0x360] ss:$8 sps:$4 sm:$0xff]  }
  0x85   :  { %985 = vmatprep.subr.bf16.mxu0 %v1801_v21  ;;  %1276 = vmatpush1.bf16.msra.mxu1 %v1934_v59  ;;  %v1873_v21 = vld [vmem:[#allocation2 + $0x374] ss:$8 sps:$4 sm:$0xff]  }
  0x86   :  { %1277 = vmatprep.subr.bf16.mxu1 %v1939_v61 }
  0x88   :  { %986 = vmatpush1.bf16.msra.mxu0 %v1799_v24  ;;  %v1877_v24 = vld [vmem:[#allocation2 + $0x380] ss:$8 sps:$4 sm:$0xff]  }
  0x89   :  { %987 = vmatprep.subr.bf16.mxu0 %v1804_v25  ;;  %1278 = vmatpush1.bf16.msra.mxu1 %v1937_v1  ;;  %v1885_v25 = vld [vmem:[#allocation2 + $0x394] ss:$8 sps:$4 sm:$0xff]  }
  0x8a   :  { %1279 = vmatprep.subr.bf16.mxu1 %v1942_v47 }
  0x8c   :  { %988 = vmatpush1.bf16.msra.mxu0 %v1802_v28  ;;  %v1889_v28 = vld [vmem:[#allocation2 + $0x3a0] ss:$8 sps:$4 sm:$0xff]  }
  0x8d   :  { %989 = vmatprep.subr.bf16.mxu0 %v1807_v29  ;;  %1280 = vmatpush1.bf16.msra.mxu1 %v1940_v3  ;;  %v1897_v29 = vld [vmem:[#allocation2 + $0x3b4] ss:$8 sps:$4 sm:$0xff]  }
  0x8e   :  { %1281 = vmatprep.subr.bf16.mxu1 %v1945_v4 }
  0x90   :  { %990 = vmatpush1.bf16.msra.mxu0 %v1805_v31  ;;  %v1903_v31 = vld [vmem:[#allocation2 + $0x3c4] ss:$8 sps:$4 sm:$0xff]  }
  0x91   :  { %991 = vmatprep.subr.bf16.mxu0 %v1810_v33  ;;  %1282 = vmatpush1.bf16.msra.mxu1 %v1943_v7  ;;  %v1909_v33 = vld [vmem:[#allocation2 + $0x3d4] ss:$8 sps:$4 sm:$0xff]  }
  0x92   :  { %1283 = vmatprep.subr.bf16.mxu1 %v1948_v8 }
  0x94   :  { %992 = vmatpush1.bf16.msra.mxu0 %v1808_v37  ;;  %v1918_v37 = vld [vmem:[#allocation2 + $0x3f4] ss:$8 sps:$4 sm:$0xff]  }
  0x95   :  { %993 = vmatprep.subr.bf16.mxu0 %v1813_v38  ;;  %1284 = vmatpush1.bf16.msra.mxu1 %v1946_v11  ;;  %v1916_v38 = vld [vmem:[#allocation2 + $0x3f0] ss:$8 sps:$4 sm:$0xff]  }
  0x96   :  { %1285 = vmatprep.subr.bf16.mxu1 %v1951_v12 }
  0x98   :  { %994 = vmatpush1.bf16.msra.mxu0 %v1811_v41  ;;  %v1957_v41 = vld [vmem:[%s2263_s3 + $0xc4] ss:$8 sps:$4 sm:$0xff]  }
  0x99   :  { %995 = vmatprep.subr.bf16.mxu0 %v1816_v42  ;;  %1286 = vmatpush1.bf16.msra.mxu1 %v1949_v15  ;;  %v1958_v42 = vld [vmem:[%s2263_s3 + $0xd0] ss:$8 sps:$4 sm:$0xff]   ;;  %v1969_v15 = vld [vmem:[#allocation4 + $0x48] sm:$0xff]  }
  0x9a   :  { %1287 = vmatprep.subr.bf16.mxu1 %v1954_v16  ;;  %v1970_v16 = vld [vmem:[#allocation4 + $0x8] sm:$0xff]  }
  0x9c   :  { %996 = vmatpush1.bf16.msra.mxu0 %v1814_v45  ;;  %v1961_v45 = vld [vmem:[%s2263_s3 + $0xe0] ss:$8 sps:$4 sm:$0xff]  }
  0x9d   :  { %997 = vmatprep.subr.bf16.mxu0 %v1819_v46  ;;  %1288 = vmatpush1.bf16.msra.mxu1 %v1952_v19  ;;  %v1966_v46 = vld [vmem:[%s2263_s3 + $0xf4] ss:$8 sps:$4 sm:$0xff]  }
  0x9e   :  { %1289 = vmatprep.subr.bf16.mxu1 %v1957_v41  ;;  %v1973_v19 = vld [vmem:[#allocation4 + $0x58] sm:$0xff]  }
  0xa0   :  { %998 = vmatpush1.bf16.msra.mxu0 %v1817_v51 }
  0xa1   :  { %999 = vmatprep.subr.bf16.mxu0 %v1825_v52  ;;  %1290 = vmatpush1.bf16.msra.mxu1 %v1955_v40 }
  0xa2   :  { %1291 = vmatprep.subr.bf16.mxu1 %v1960_v43 }
  0xa4   :  { %1000 = vmatpush1.bf16.msra.mxu0 %v1823_v55  ;;  %v193_v55 = vlaneseq }
  0xa5   :  { %1012 = vmatprep.subr.bf16.mxu0 %v1831_v56  ;;  %1292 = vmatpush1.bf16.msra.mxu1 %v1958_v42 }
  0xa6   :  { %1293 = vmatprep.subr.bf16.mxu1 %v1963_v44  ;;  %v194_v56 = vshrl.u32 %v193_v55, 7 }
  0xa7   :  { %1002 = vmatmul.mubr.bf16.vlgmr.msra.gmra.mrb[0].mxu0 %v1502_v60 }
  0xa8   :  { %1013 = vmatpush1.bf16.msra.mxu0 %v1829_v62  ;;  %1044 = vmatprep.mubr.bf16.mxu0 %v1505_v63  ;;  %v195_v57 = vsub.s32 0, %v194_v56  ;;  %v199_v59 = vsub.s32 1, %v194_v56 }
  0xa9   :  { %1014 = vmatprep.subr.bf16.mxu0 %v1837_v0  ;;  %1294 = vmatpush1.bf16.msra.mxu1 %v1961_v45 }
  0xaa   :  { %1295 = vmatprep.subr.bf16.mxu1 %v1966_v46  ;;  %v196_v60 = vrot.slane %v191_v58, %v195_v57  ;;  %v200_v61 = vrot.slane %v191_v58, %v199_v59 }
  0xac   :  { %1015 = vmatpush1.bf16.msra.mxu0 %v1835_v48 }
  0xad   :  { %1016 = vmatprep.subr.bf16.mxu0 %v1843_v2  ;;  %1296 = vmatpush1.bf16.msra.mxu1 %v1964_v49  ;;  %v1666_v49 = vld [vmem:[%s2266_s6] ss:$0 sm:$0xff] }
  0xae   :  { %1683 = vmatprep.subr.bf16.mxu1 %v1967_v50 }
  0xb0   :  { %1017 = vmatpush1.bf16.msra.mxu0 %v1841_v5 }
  0xb1   :  { %1018 = vmatprep.subr.bf16.mxu0 %v1849_v6 }
  0xb4   :  { %1019 = vmatpush1.bf16.msra.mxu0 %v1847_v9 }
  0xb5   :  { %1020 = vmatprep.subr.bf16.mxu0 %v1855_v10 }
  0xb8   :  { %1021 = vmatpush1.bf16.msra.mxu0 %v1853_v13 }
  0xb9   :  { %1022 = vmatprep.subr.bf16.mxu0 %v1861_v14  ;;  %v1968_v14 = vld [vmem:[#allocation4] sm:$0xff]  }
  0xbc   :  { %1023 = vmatpush1.bf16.msra.mxu0 %v1859_v17  ;;  %v1971_v17 = vld [vmem:[#allocation4 + $0x50] sm:$0xff]  }
  0xbd   :  { %1024 = vmatprep.subr.bf16.mxu0 %v1867_v18  ;;  %v1972_v18 = vld [vmem:[#allocation4 + $0x10] sm:$0xff]  }
  0xc0   :  { %1025 = vmatpush1.bf16.msra.mxu0 %v1865_v20  ;;  %v1974_v20 = vld [vmem:[#allocation4 + $0x18] sm:$0xff]  }
  0xc1   :  { %1026 = vmatprep.subr.bf16.mxu0 %v1873_v21  ;;  %v1975_v21 = vld [vmem:[#allocation4 + $0x60] sm:$0xff]  }
  0xc4   :  { %1027 = vmatpush1.bf16.msra.mxu0 %v1871_v22  ;;  %v1976_v22 = vld [vmem:[#allocation4 + $0x20] sm:$0xff]  }
  0xc5   :  { %1028 = vmatprep.subr.bf16.mxu0 %v1879_v23  ;;  %v1977_v23 = vld [vmem:[#allocation4 + $0x68] sm:$0xff]  }
  0xc8   :  { %1029 = vmatpush1.bf16.msra.mxu0 %v1877_v24  ;;  %v1978_v24 = vld [vmem:[#allocation4 + $0x28] sm:$0xff]  }
  0xc9   :  { %1030 = vmatprep.subr.bf16.mxu0 %v1885_v25  ;;  %v1979_v25 = vld [vmem:[#allocation4 + $0x70] sm:$0xff]  }
  0xcc   :  { %1031 = vmatpush1.bf16.msra.mxu0 %v1883_v26  ;;  %v1980_v26 = vld [vmem:[#allocation4 + $0x30] sm:$0xff]  }
  0xcd   :  { %1032 = vmatprep.subr.bf16.mxu0 %v1891_v27  ;;  %v1981_v27 = vld [vmem:[#allocation4 + $0x78] sm:$0xff]  }
  0xd0   :  { %1033 = vmatpush1.bf16.msra.mxu0 %v1889_v28  ;;  %v1982_v28 = vld [vmem:[#allocation4 + $0x38] sm:$0xff]  }
  0xd1   :  { %1034 = vmatprep.subr.bf16.mxu0 %v1897_v29  ;;  %v1093_v29 = vld [vmem:[%s2264_s4] sm:$0x3] }
  0xd4   :  { %1035 = vmatpush1.bf16.msra.mxu0 %v1895_v30  ;;  %v1098_v30 = vrot.slane %v1093_v29, %v195_v57 }
  0xd5   :  { %1036 = vmatprep.subr.bf16.mxu0 %v1903_v31  ;;  %v1102_v31 = vrot.slane %v1093_v29, %v199_v59 }
  0xd8   :  { %1037 = vmatpush1.bf16.msra.mxu0 %v1901_v32 }
  0xd9   :  { %1038 = vmatprep.subr.bf16.mxu0 %v1909_v33 }
  0xdc   :  { %1039 = vmatpush1.bf16.msra.mxu0 %v1907_v34 }
  0xdd   :  { %1040 = vmatprep.subr.bf16.mxu0 %v1915_v35 }
  0xe0   :  { %1041 = vmatpush1.bf16.msra.mxu0 %v1913_v36 }
  0xe1   :  { %1042 = vmatprep.subr.bf16.mxu0 %v1918_v37 }
  0xe4   :  { %1043 = vmatpush1.bf16.msra.mxu0 %v1916_v38 }
  0xe7   :  { %1045 = vmatmul.mubr.bf16.vlgmr.msra.gmra.mrb[0].mxu0 %v1504_v39 }
 0x143   :  { %v917_v51 = vpop.f32.mrb[0].mxu1 }
 0x144   :  { %v919_v52 = vpop.f32.mrb[1].mxu1  ;;  %v918_v62 = vadd.f32 %v917_v51, %v196_v60 }
 0x145   :  { %v921_v53 = vpop.f32.mrb[2].mxu1  ;;  %v920_v63 = vadd.f32 %v919_v52, %v200_v61 }
 0x146   :  { %v923_v54 = vpop.f32.mrb[3].mxu1  ;;  %v922_v1 = vadd.f32 %v921_v53, %v196_v60 }
 0x147   :  { %v924_v2 = vadd.f32 %v923_v54, %v200_v61 }
 0x1ba   :  { %v1046_v0 = vpop.f32.mrb[0].mxu0 }
 0x1bb   :  { %v1706_v47 = vadd.f32 %v1046_v0, %v918_v62  ;;  %v1048_v48 = vpop.f32.mrb[1].mxu0 }
 0x1bc   :  { %v1708_v3 = vadd.f32 %v1048_v48, %v920_v63  ;;  %v1050_v4 = vpop.f32.mrb[2].mxu0 }
 0x1bd   :  { %v1710_v5 = vadd.f32 %v1050_v4, %v922_v1  ;;  %v1052_v6 = vpop.f32.mrb[3].mxu0  ;;  %v1055_v8 = vmax.f32 %v1706_v47, 0.0 }
 0x1be   :  { %v1712_v7 = vadd.f32 %v1052_v6, %v924_v2  ;;  %v1056_v10 = vmax.f32 %v1708_v3, 0.0 }
 0x1bf   :  { %v1057_v9 = vmax.f32 %v1710_v5, 0.0 }
 0x1c0   :  { %v1058_v11 = vmax.f32 %v1712_v7, 0.0 }
 0x1c1   :  { %v1059_v12 = vpack.c.bf16 %v1057_v9, %v1055_v8 }
 0x1c2   :  { %v1060_v13 = vpack.c.bf16 %v1058_v11, %v1056_v10 }
 0x1c4   :  { %1297 = vmatprep.mubr.bf16.mxu1 %v1060_v13 }
 0x1c5   :  { %1298 = vmatmul.mubr.bf16.vlgmr.msra.gmra.mrb[4].mxu1 %v1059_v12 }
 0x1c6   :  { %1684 = vmatpush3.bf16.msra.mxu1 %v1968_v14 }
 0x1c7   :  { %1685 = vmatprep.subr.bf16.mxu1 %v1969_v15 }
 0x1ca   :  { %1686 = vmatpush3.bf16.msra.mxu1 %v1970_v16 }
 0x1cb   :  { %1687 = vmatprep.subr.bf16.mxu1 %v1971_v17 }
 0x1ce   :  { %1688 = vmatpush3.bf16.msra.mxu1 %v1972_v18 }
 0x1cf   :  { %1689 = vmatprep.subr.bf16.mxu1 %v1973_v19 }
 0x1d2   :  { %1690 = vmatpush3.bf16.msra.mxu1 %v1974_v20 }
 0x1d3   :  { %1691 = vmatprep.subr.bf16.mxu1 %v1975_v21 }
 0x1d6   :  { %1692 = vmatpush3.bf16.msra.mxu1 %v1976_v22 }
 0x1d7   :  { %1693 = vmatprep.subr.bf16.mxu1 %v1977_v23 }
 0x1da   :  { %1694 = vmatpush3.bf16.msra.mxu1 %v1978_v24 }
 0x1db   :  { %1695 = vmatprep.subr.bf16.mxu1 %v1979_v25 }
 0x1de   :  { %1696 = vmatpush3.bf16.msra.mxu1 %v1980_v26 }
 0x1df   :  { %1697 = vmatprep.subr.bf16.mxu1 %v1981_v27 }
 0x1e2   :  { %1698 = vmatpush3.bf16.msra.mxu1 %v1982_v28 }
 0x298   :  { %v1299_v32 = vpop.f32.mrb[4].mxu1 }
 0x299   :  { %v1300_v33 = vadd.f32 %v1299_v32, %v1098_v30  ;;  %v1301_v34 = vpop.f32.mrb[5].mxu1 }
 0x29a   :  { %v1302_v35 = vadd.f32 %v1301_v34, %v1102_v31  ;;  %v1303_v36 = vpop.f32.mrb[6].mxu1 }
 0x29b   :  { %v1304_v37 = vadd.f32 %v1303_v36, %v1098_v30  ;;  %v1305_v38 = vpop.f32.mrb[7].mxu1  ;;  %v1308_v40 = vmax.f32 %v1300_v33, 0.0 }
 0x29c   :  { %v1306_v39 = vadd.f32 %v1305_v38, %v1102_v31  ;;  %v1309_v42 = vmax.f32 %v1302_v35, 0.0 }
 0x29d   :  { %v1310_v41 = vmax.f32 %v1304_v37, 0.0 }
 0x29e   :  { %v1311_v43 = vmax.f32 %v1306_v39, 0.0 }
 0x29f   :  { %v1312_v44 = vpack.c.bf16 %v1310_v41, %v1308_v40 }
 0x2a0   :  { %v1313_v45 = vpack.c.bf16 %v1311_v43, %v1309_v42 }
 0x2a2   :  { %1481 = vmatprep.mubr.bf16.mxu1 %v1313_v45 }
 0x2a3   :  { %1482 = vmatmul.mubr.bf16.vlgmr.msra.gmra.mrb[8].mxu1 %v1312_v44 }
 0x376   :  { %v1699_v46 = vpop.f32.mrb[8].mxu1 }
 0x377   :  { %v1700_v50 = vpop.f32.mrb[9].mxu1 }
 0x378   :  { %v1701_v51 = vadd.f32 %v1700_v50, %v1699_v46  ;;  %v1702_v52 = vpop.f32.mrb[10].mxu1 }
 0x379   :  { %v1703_v53 = vpop.f32.mrb[11].mxu1 }
 0x37a   :  { %v1484_v54 = vadd.f32 %v1701_v51, %v1666_v49  ;;  %v1704_v55 = vadd.f32 %v1703_v53, %v1702_v52 }
 0x37c   :  { %1490 = vst [vmem:[%s2267_s7] sm:$0xff] %v1484_v54  ;;  %v1487_v56 = vadd.f32 %v1704_v55, %v1666_v49 }
 0x37e   :  { %1491 = vst [vmem:[%s2267_s7 + $0x8] sm:$0xff] %v1487_v56 }
 0x37f   :  { %1496 = vsyncpa [#allocation3], 1 }
 0x380   :  { %1497 = vsyncpa [#allocation5], 1 }

</bundles_post_ra>
